<compile_context>
chip_gen: v6e
topology: v6e:2x2x1
jax: 0.10.0
libtpu: 0.0.40
codegen_flags: <defaults>
</compile_context>

<pallas_src>
import jax
import jax.numpy as jnp
from jax import lax
from jax.experimental import pallas as pl
from jax.experimental.pallas import tpu as pltpu

EPS = 1e-3
VMEM_LIMIT = 32 * 1024 * 1024   # portable across v5e/v6e/v7x


# ---------- pass 1: conv (in-kernel im2col via row taps) + partial BN stats ----
def _conv_stats_kernel(x_ref, w_ref, y_ref, s_ref, sq_ref):
    """x_ref:  (1, H, W*Cin)         f32  one NHWC image, W and Cin share lanes
       w_ref:  (KH, W*Cin, OW*Cout)  f32  banded weights, one slab per row tap
       y_ref:  (1, OH, OW*Cout)      f32  conv output (lane-packed channels)
       s_ref, sq_ref: (1, 1, OW*Cout) f32 per-image column sums / sums of squares
    """
    kh = w_ref.shape[0]
    oh = y_ref.shape[1]
    acc = jnp.zeros(y_ref.shape[1:], jnp.float32)
    for i in range(kh):                          # KH row taps; one MXU matmul each
        acc = acc + jnp.dot(x_ref[0, i:i + oh, :], w_ref[i],
                            preferred_element_type=jnp.float32)
    y_ref[0] = acc
    s_ref[0] = jnp.sum(acc, axis=0, keepdims=True)
    sq_ref[0] = jnp.sum(acc * acc, axis=0, keepdims=True)


# ---------- pass 2: pure VPU normalize + affine + ReLU over stored conv -------
def _bn_relu_kernel(y_ref, scale_ref, shift_ref, o_ref):
    o_ref[...] = jnp.maximum(y_ref[...] * scale_ref[...] + shift_ref[...], 0.0)


@jax.jit
def batch_norm_conv2d(x_nchw, conv_w, conv_b, bn_gamma, bn_beta):
    """x_nchw: (N, Cin, H, W); conv_w: (Cout, Cin, KH, KW). Returns NCHW f32."""
    # Conv bias is algebraically a no-op under training-mode BN (mean
    # subtraction cancels any per-channel constant), so it is not plumbed in.
    del conv_b

    n, cin, hin, win = x_nchw.shape
    cout, _, kh, kw = conv_w.shape
    oh, ow = hin - kh + 1, win - kw + 1

    # ---- layout glue (no data amplification): NCHW -> (N, H, W*Cin) f32 ----
    x2d = jnp.transpose(x_nchw, (0, 2, 3, 1)).reshape(n, hin, win * cin)
    x2d = x2d.astype(jnp.float32)

    # Banded weight, one (W*Cin, OW*Cout) slab per kernel row i:
    #   Wb[i, w*Cin + c, ow*Cout + co] = conv_w[co, c, i, w - ow]  if 0 <= w-ow < kw
    # so that  y[oh, ow, co] = sum_i  x2d[oh + i, :] @ Wb[i]   is the VALID conv.
    w_tap = jnp.transpose(conv_w, (2, 3, 1, 0)).astype(jnp.float32)  # (kh,kw,cin,cout)
    wb5 = jnp.zeros((kh, win, cin, ow, cout), jnp.float32)
    for j in range(kw):
        sel = jnp.eye(win, ow, k=-j, dtype=jnp.float32)   # sel[w, ow] = 1 iff w == ow + j
        wb5 = wb5 + jnp.einsum('wv,ico->iwcvo', sel, w_tap[:, j])
    w_band = wb5.reshape(kh, win * cin, ow * cout)

    cparams = pltpu.CompilerParams(dimension_semantics=("parallel",),
                                   vmem_limit_bytes=VMEM_LIMIT)

    # ---- pass 1: conv + per-image partial stats (parallel over N) ----
    y2d, psum, psumsq = pl.pallas_call(
        _conv_stats_kernel,
        grid=(n,),
        in_specs=[pl.BlockSpec((1, hin, win * cin), lambda b: (b, 0, 0)),
                  pl.BlockSpec((kh, win * cin, ow * cout), lambda b: (0, 0, 0))],
        out_specs=[pl.BlockSpec((1, oh, ow * cout), lambda b: (b, 0, 0)),
                   pl.BlockSpec((1, 1, ow * cout), lambda b: (b, 0, 0)),
                   pl.BlockSpec((1, 1, ow * cout), lambda b: (b, 0, 0))],
        out_shape=[jax.ShapeDtypeStruct((n, oh, ow * cout), jnp.float32),
                   jax.ShapeDtypeStruct((n, 1, ow * cout), jnp.float32),
                   jax.ShapeDtypeStruct((n, 1, ow * cout), jnp.float32)],
        compiler_params=cparams,
    )(x2d, w_band)

    # ---- tiny cross-tile reduction + BN fold (plain JAX on (Cout,) vectors) ----
    # Variance via E[x^2] - mean^2 in f32; with the conv bias dropped the means
    # are near zero, so cancellation is benign.  Clamp against tiny negatives.
    count = float(n * oh * ow)
    s_c = jnp.sum(psum.reshape(n, ow, cout), axis=(0, 1))
    sq_c = jnp.sum(psumsq.reshape(n, ow, cout), axis=(0, 1))
    mean = s_c / count
    var = jnp.maximum(sq_c / count - mean * mean, 0.0)
    scale = bn_gamma.astype(jnp.float32) * lax.rsqrt(var + EPS)
    shift = bn_beta.astype(jnp.float32) - mean * scale
    scale_l = jnp.tile(scale, ow).reshape(1, 1, ow * cout)   # lane-packed per channel
    shift_l = jnp.tile(shift, ow).reshape(1, 1, ow * cout)

    # ---- pass 2: scale/shift/ReLU over the stored conv result (VPU only) ----
    out2d = pl.pallas_call(
        _bn_relu_kernel,
        grid=(n,),
        in_specs=[pl.BlockSpec((1, oh, ow * cout), lambda b: (b, 0, 0)),
                  pl.BlockSpec((1, 1, ow * cout), lambda b: (0, 0, 0)),
                  pl.BlockSpec((1, 1, ow * cout), lambda b: (0, 0, 0))],
        out_specs=pl.BlockSpec((1, oh, ow * cout), lambda b: (b, 0, 0)),
        out_shape=jax.ShapeDtypeStruct((n, oh, ow * cout), jnp.float32),
        input_output_aliases={0: 0},       # write ReLU output in place of y (P8)
        compiler_params=cparams,
    )(y2d, scale_l, shift_l)

    # ---- layout glue: back to NCHW ----
    out = out2d.reshape(n, oh, ow, cout)
    return jnp.transpose(out, (0, 3, 1, 2))


def _reference(x_nchw, conv_w, conv_b, bn_gamma, bn_beta):
    """Pure-JAX f32 reference mirroring PyTorch Conv2d + BatchNorm2d(train) + ReLU."""
    y = lax.conv_general_dilated(
        x_nchw, conv_w, window_strides=(1, 1), padding="VALID",
        dimension_numbers=("NCHW", "OIHW", "NCHW"))
    y = y + conv_b.reshape(1, -1, 1, 1)
    mean = jnp.mean(y, axis=(0, 2, 3), keepdims=True)
    var = jnp.mean((y - mean) ** 2, axis=(0, 2, 3), keepdims=True)
    y = (y - mean) * lax.rsqrt(var + EPS)
    y = y * bn_gamma.reshape(1, -1, 1, 1) + bn_beta.reshape(1, -1, 1, 1)
    return jnp.maximum(y, 0.0)


if __name__ == "__main__":
    key = jax.random.PRNGKey(0)
    k_x, k_w, k_b, k_g, k_bt = jax.random.split(key, 5)

    N, CIN, H, W = 2, 4, 16, 16
    COUT, KH, KW = 8, 3, 3

    x = jax.random.normal(k_x, (N, CIN, H, W), dtype=jnp.float32)

    # Deterministic parameter init (shapes match nn.Conv2d / nn.BatchNorm2d).
    fan_in = CIN * KH * KW
    bound = 1.0 / (fan_in ** 0.5)
    conv_w = jax.random.uniform(k_w, (COUT, CIN, KH, KW), jnp.float32,
                                minval=-bound, maxval=bound)
    conv_b = jax.random.uniform(k_b, (COUT,), jnp.float32,
                                minval=-bound, maxval=bound)
    bn_gamma = 1.0 + 0.1 * jax.random.normal(k_g, (COUT,), dtype=jnp.float32)
    bn_beta = 0.1 * jax.random.normal(k_bt, (COUT,), dtype=jnp.float32)

    out = batch_norm_conv2d(x, conv_w, conv_b, bn_gamma, bn_beta)
    out = jax.block_until_ready(out)

    ref = _reference(x, conv_w, conv_b, bn_gamma, bn_beta)
    assert out.shape == (N, COUT, H - KH + 1, W - KW + 1), out.shape
    # Fully f32 pipeline now -> tight tolerance.
    assert jnp.allclose(out, ref, atol=1e-3, rtol=1e-3), float(
        jnp.max(jnp.abs(out - ref)))

    print("KERNEL_OK")
</pallas_src>

<mosaic_0001>
module attributes {stable_mosaic.version = 11 : i64} {
  func.func @_conv_stats_kernel(%arg0: i32, %arg1: memref<1x16x64xf32, #tpu.memory_space<vmem>>, %arg2: memref<3x64x112xf32, #tpu.memory_space<vmem>>, %arg3: memref<1x14x112xf32, #tpu.memory_space<vmem>>, %arg4: memref<1x1x112xf32, #tpu.memory_space<vmem>>, %arg5: memref<1x1x112xf32, #tpu.memory_space<vmem>>) attributes {dimension_semantics = [#tpu.dimension_semantics<parallel>], iteration_bounds = array<i64: 2>, scalar_prefetch = 0 : i64, scratch_operands = 0 : i64, tpu.core_type = #tpu.core_type<tc>, window_params = [{transform_indices = @transform_0, window_bounds = array<i64: 1, 16, 64>}, {pipeline_mode = #tpu.pipeline_mode<synchronous>, transform_indices = @transform_1, window_bounds = array<i64: 3, 64, 112>}, {transform_indices = @transform_2, window_bounds = array<i64: 1, 14, 112>}, {transform_indices = @transform_3, window_bounds = array<i64: 1, 1, 112>}, {transform_indices = @transform_4, window_bounds = array<i64: 1, 1, 112>}]} {
    %cst = arith.constant 0.000000e+00 : f32
    %0 = vector.broadcast %cst : f32 to vector<14x112xf32>
    %c0 = arith.constant 0 : index
    %c0_0 = arith.constant 0 : index
    %c0_1 = arith.constant 0 : index
    %1 = vector.load %arg1[%c0, %c0_0, %c0_1] : memref<1x16x64xf32, #tpu.memory_space<vmem>>, vector<1x14x64xf32>
    %2 = vector.shape_cast %1 : vector<1x14x64xf32> to vector<14x64xf32>
    %c0_2 = arith.constant 0 : index
    %c0_3 = arith.constant 0 : index
    %c0_4 = arith.constant 0 : index
    %3 = vector.load %arg2[%c0_2, %c0_3, %c0_4] : memref<3x64x112xf32, #tpu.memory_space<vmem>>, vector<1x64x112xf32>
    %4 = vector.shape_cast %3 : vector<1x64x112xf32> to vector<64x112xf32>
    %cst_5 = arith.constant dense<0.000000e+00> : vector<14x112xf32>
    %5 = tpu.matmul %2, %4, %cst_5 {dimension_numbers = #tpu.dot_dimension_numbers<[1], [0], [0], [1], [0, 0, 1, 1], [], []>} : vector<14x64xf32>, vector<64x112xf32>, vector<14x112xf32> -> vector<14x112xf32>
    %6 = arith.addf %0, %5 : vector<14x112xf32>
    %c0_6 = arith.constant 0 : index
    %c1 = arith.constant 1 : index
    %c0_7 = arith.constant 0 : index
    %7 = vector.load %arg1[%c0_6, %c1, %c0_7] : memref<1x16x64xf32, #tpu.memory_space<vmem>>, vector<1x14x64xf32>
    %8 = vector.shape_cast %7 : vector<1x14x64xf32> to vector<14x64xf32>
    %c1_8 = arith.constant 1 : index
    %c0_9 = arith.constant 0 : index
    %c0_10 = arith.constant 0 : index
    %9 = vector.load %arg2[%c1_8, %c0_9, %c0_10] : memref<3x64x112xf32, #tpu.memory_space<vmem>>, vector<1x64x112xf32>
    %10 = vector.shape_cast %9 : vector<1x64x112xf32> to vector<64x112xf32>
    %cst_11 = arith.constant dense<0.000000e+00> : vector<14x112xf32>
    %11 = tpu.matmul %8, %10, %cst_11 {dimension_numbers = #tpu.dot_dimension_numbers<[1], [0], [0], [1], [0, 0, 1, 1], [], []>} : vector<14x64xf32>, vector<64x112xf32>, vector<14x112xf32> -> vector<14x112xf32>
    %12 = arith.addf %6, %11 : vector<14x112xf32>
    %c0_12 = arith.constant 0 : index
    %c2 = arith.constant 2 : index
    %c0_13 = arith.constant 0 : index
    %13 = vector.load %arg1[%c0_12, %c2, %c0_13] : memref<1x16x64xf32, #tpu.memory_space<vmem>>, vector<1x14x64xf32>
    %14 = vector.shape_cast %13 : vector<1x14x64xf32> to vector<14x64xf32>
    %c2_14 = arith.constant 2 : index
    %c0_15 = arith.constant 0 : index
    %c0_16 = arith.constant 0 : index
    %15 = vector.load %arg2[%c2_14, %c0_15, %c0_16] : memref<3x64x112xf32, #tpu.memory_space<vmem>>, vector<1x64x112xf32>
    %16 = vector.shape_cast %15 : vector<1x64x112xf32> to vector<64x112xf32>
    %cst_17 = arith.constant dense<0.000000e+00> : vector<14x112xf32>
    %17 = tpu.matmul %14, %16, %cst_17 {dimension_numbers = #tpu.dot_dimension_numbers<[1], [0], [0], [1], [0, 0, 1, 1], [], []>} : vector<14x64xf32>, vector<64x112xf32>, vector<14x112xf32> -> vector<14x112xf32>
    %18 = arith.addf %12, %17 : vector<14x112xf32>
    %c0_18 = arith.constant 0 : index
    %c0_19 = arith.constant 0 : index
    %c0_20 = arith.constant 0 : index
    %19 = vector.load %arg3[%c0_18, %c0_19, %c0_20] : memref<1x14x112xf32, #tpu.memory_space<vmem>>, vector<1x14x112xf32>
    %20 = vector.shape_cast %19 : vector<1x14x112xf32> to vector<14x112xf32>
    %21 = vector.shape_cast %18 : vector<14x112xf32> to vector<1x14x112xf32>
    tpu.vector_store %arg3[%c0_18, %c0_19, %c0_20], %21 {strides = array<i32>} : memref<1x14x112xf32, #tpu.memory_space<vmem>>, vector<1x14x112xf32>,
    %cst_21 = arith.constant dense<0.000000e+00> : vector<112xf32>
    %22 = vector.multi_reduction <add>, %18, %cst_21 [0] : vector<14x112xf32> to vector<112xf32>
    %23 = vector.shape_cast %22 : vector<112xf32> to vector<1x112xf32>
    %c0_22 = arith.constant 0 : index
    %c0_23 = arith.constant 0 : index
    %c0_24 = arith.constant 0 : index
    %24 = vector.load %arg4[%c0_22, %c0_23, %c0_24] : memref<1x1x112xf32, #tpu.memory_space<vmem>>, vector<1x1x112xf32>
    %25 = vector.shape_cast %24 : vector<1x1x112xf32> to vector<1x112xf32>
    %26 = vector.shape_cast %23 : vector<1x112xf32> to vector<1x1x112xf32>
    tpu.vector_store %arg4[%c0_22, %c0_23, %c0_24], %26 {strides = array<i32>} : memref<1x1x112xf32, #tpu.memory_space<vmem>>, vector<1x1x112xf32>,
    %27 = arith.mulf %18, %18 : vector<14x112xf32>
    %cst_25 = arith.constant dense<0.000000e+00> : vector<112xf32>
    %28 = vector.multi_reduction <add>, %27, %cst_25 [0] : vector<14x112xf32> to vector<112xf32>
    %29 = vector.shape_cast %28 : vector<112xf32> to vector<1x112xf32>
    %c0_26 = arith.constant 0 : index
    %c0_27 = arith.constant 0 : index
    %c0_28 = arith.constant 0 : index
    %30 = vector.load %arg5[%c0_26, %c0_27, %c0_28] : memref<1x1x112xf32, #tpu.memory_space<vmem>>, vector<1x1x112xf32>
    %31 = vector.shape_cast %30 : vector<1x1x112xf32> to vector<1x112xf32>
    %32 = vector.shape_cast %29 : vector<1x112xf32> to vector<1x1x112xf32>
    tpu.vector_store %arg5[%c0_26, %c0_27, %c0_28], %32 {strides = array<i32>} : memref<1x1x112xf32, #tpu.memory_space<vmem>>, vector<1x1x112xf32>,
    return
  }
  func.func @transform_0(%arg0: i32) -> (i32, i32, i32) {
    %c0_i32 = arith.constant 0 : i32
    %c0_i32_0 = arith.constant 0 : i32
    %c0_i32_1 = arith.constant 0 : i32
    return %arg0, %c0_i32, %c0_i32_0 : i32, i32, i32
  }
  func.func @transform_1(%arg0: i32) -> (i32, i32, i32) {
    %c0_i32 = arith.constant 0 : i32
    %c0_i32_0 = arith.constant 0 : i32
    %c0_i32_1 = arith.constant 0 : i32
    %c0_i32_2 = arith.constant 0 : i32
    return %c0_i32, %c0_i32_0, %c0_i32_1 : i32, i32, i32
  }
  func.func @transform_2(%arg0: i32) -> (i32, i32, i32) {
    %c0_i32 = arith.constant 0 : i32
    %c0_i32_0 = arith.constant 0 : i32
    %c0_i32_1 = arith.constant 0 : i32
    return %arg0, %c0_i32, %c0_i32_0 : i32, i32, i32
  }
  func.func @transform_3(%arg0: i32) -> (i32, i32, i32) {
    %c0_i32 = arith.constant 0 : i32
    %c0_i32_0 = arith.constant 0 : i32
    %c0_i32_1 = arith.constant 0 : i32
    return %arg0, %c0_i32, %c0_i32_0 : i32, i32, i32
  }
  func.func @transform_4(%arg0: i32) -> (i32, i32, i32) {
    %c0_i32 = arith.constant 0 : i32
    %c0_i32_0 = arith.constant 0 : i32
    %c0_i32_1 = arith.constant 0 : i32
    return %arg0, %c0_i32, %c0_i32_0 : i32, i32, i32
  }
}

module attributes {stable_mosaic.version = 11 : i64} {
  func.func @_bn_relu_kernel(%arg0: i32, %arg1: memref<1x14x112xf32, #tpu.memory_space<vmem>>, %arg2: memref<1x1x112xf32, #tpu.memory_space<vmem>>, %arg3: memref<1x1x112xf32, #tpu.memory_space<vmem>>, %arg4: memref<1x14x112xf32, #tpu.memory_space<vmem>>) attributes {dimension_semantics = [#tpu.dimension_semantics<parallel>], iteration_bounds = array<i64: 2>, scalar_prefetch = 0 : i64, scratch_operands = 0 : i64, tpu.core_type = #tpu.core_type<tc>, window_params = [{transform_indices = @transform_0, window_bounds = array<i64: 1, 14, 112>}, {pipeline_mode = #tpu.pipeline_mode<synchronous>, transform_indices = @transform_1, window_bounds = array<i64: 1, 1, 112>}, {pipeline_mode = #tpu.pipeline_mode<synchronous>, transform_indices = @transform_2, window_bounds = array<i64: 1, 1, 112>}, {transform_indices = @transform_3, window_bounds = array<i64: 1, 14, 112>}]} {
    %c0 = arith.constant 0 : index
    %c0_0 = arith.constant 0 : index
    %c0_1 = arith.constant 0 : index
    %0 = vector.load %arg1[%c0, %c0_0, %c0_1] : memref<1x14x112xf32, #tpu.memory_space<vmem>>, vector<1x14x112xf32>
    %c0_2 = arith.constant 0 : index
    %c0_3 = arith.constant 0 : index
    %c0_4 = arith.constant 0 : index
    %1 = vector.load %arg2[%c0_2, %c0_3, %c0_4] : memref<1x1x112xf32, #tpu.memory_space<vmem>>, vector<1x1x112xf32>
    %2 = vector.broadcast %1 : vector<1x1x112xf32> to vector<1x14x112xf32>
    %3 = arith.mulf %0, %2 : vector<1x14x112xf32>
    %c0_5 = arith.constant 0 : index
    %c0_6 = arith.constant 0 : index
    %c0_7 = arith.constant 0 : index
    %4 = vector.load %arg3[%c0_5, %c0_6, %c0_7] : memref<1x1x112xf32, #tpu.memory_space<vmem>>, vector<1x1x112xf32>
    %5 = vector.broadcast %4 : vector<1x1x112xf32> to vector<1x14x112xf32>
    %6 = arith.addf %3, %5 : vector<1x14x112xf32>
    %cst = arith.constant 0.000000e+00 : f32
    %7 = vector.broadcast %cst : f32 to vector<1x14x112xf32>
    %8 = arith.maximumf %6, %7 : vector<1x14x112xf32>
    %c0_8 = arith.constant 0 : index
    %c0_9 = arith.constant 0 : index
    %c0_10 = arith.constant 0 : index
    %9 = vector.load %arg4[%c0_8, %c0_9, %c0_10] : memref<1x14x112xf32, #tpu.memory_space<vmem>>, vector<1x14x112xf32>
    tpu.vector_store %arg4[%c0_8, %c0_9, %c0_10], %8 {strides = array<i32>} : memref<1x14x112xf32, #tpu.memory_space<vmem>>, vector<1x14x112xf32>,
    return
  }
  func.func @transform_0(%arg0: i32) -> (i32, i32, i32) {
    %c0_i32 = arith.constant 0 : i32
    %c0_i32_0 = arith.constant 0 : i32
    %c0_i32_1 = arith.constant 0 : i32
    return %arg0, %c0_i32, %c0_i32_0 : i32, i32, i32
  }
  func.func @transform_1(%arg0: i32) -> (i32, i32, i32) {
    %c0_i32 = arith.constant 0 : i32
    %c0_i32_0 = arith.constant 0 : i32
    %c0_i32_1 = arith.constant 0 : i32
    %c0_i32_2 = arith.constant 0 : i32
    return %c0_i32, %c0_i32_0, %c0_i32_1 : i32, i32, i32
  }
  func.func @transform_2(%arg0: i32) -> (i32, i32, i32) {
    %c0_i32 = arith.constant 0 : i32
    %c0_i32_0 = arith.constant 0 : i32
    %c0_i32_1 = arith.constant 0 : i32
    %c0_i32_2 = arith.constant 0 : i32
    return %c0_i32, %c0_i32_0, %c0_i32_1 : i32, i32, i32
  }
  func.func @transform_3(%arg0: i32) -> (i32, i32, i32) {
    %c0_i32 = arith.constant 0 : i32
    %c0_i32_0 = arith.constant 0 : i32
    %c0_i32_1 = arith.constant 0 : i32
    return %arg0, %c0_i32, %c0_i32_0 : i32, i32, i32
  }
}

</mosaic_0001>

<bundles_post_ra>
// kernel: tile.13
= control target key start
LH: loop header
LB: loop body
LE: loop exit
PB: predicated region body
PF: predicated region fallthrough
CT: control target
= control target key end

     0   :  { %s28_s0 = inlined_call_operand.vmem [shape: f32[8], index: 0, kind: input, shape index: {}]   ;;  %s29_s1 = inlined_call_operand.vmem [shape: f32[14,8], index: 1, kind: output, shape index: {}]  }
   0x1   :  { %v4_v0 = vld [vmem:[%s28_s0] ss:$0 sm:$0xff] }
   0x2   :  { %5 = vst [vmem:[%s29_s1] sm:$0xff] %v4_v0  ;;  %8 = vst [vmem:[%s29_s1 + $0x8] sm:$0xff] %v4_v0 }

// kernel: tile.14
= control target key start
LH: loop header
LB: loop body
LE: loop exit
PB: predicated region body
PF: predicated region fallthrough
CT: control target
= control target key end

     0   :  { %s117_s10 = smov 104   ;;  %s118_s11 = smov 88   ;;  %vm3_vm0 = vcmask 64512   ;;  %vm9_vm1 = vcmask 917312   ;;  %vm15_vm2 = vcmask 851712   ;;  %vm21_vm3 = vcmask 786112   ;;  %s185_s0 = inlined_call_operand.vmem [shape: f32[14,8], index: 0, kind: input, shape index: {}]   ;;  %s186_s1 = inlined_call_operand.vmem [shape: f32[1,1,112], index: 1, kind: output, shape index: {}]  }
   0x1   :  { %v91_v0 = vld [vmem:[%s185_s0 + $0xd] sm:$0x1]   ;;  %v93_v1 = vld [vmem:[%s185_s0 + $0xb] sm:$0x1]   ;;  %v92_v2 = vld [vmem:[%s185_s0 + $0xc] sm:$0x1]  }
   0x2   :  { %7 = vrot.lane.b32.xlu0 %v91_v0, %s117_s10  ;;  %19 = vrot.lane.b32.xlu1 %v93_v1, %s118_s11  ;;  %v94_v3 = vld [vmem:[%s185_s0 + $0xa] sm:$0x1]   ;;  %s119_s16 = smov 96   ;;  %s120_s17 = smov 80   ;;  %v95_v4 = vld [vmem:[%s185_s0 + $0x9] sm:$0x1]  }
   0x3   :  { %v96_v5 = vld [vmem:[%s185_s0 + $0x8] sm:$0x1]   ;;  %v2_v6 = vld [vmem:[%s185_s0] sm:$0x1]   ;;  %s121_s24 = smov 72   ;;  %s122_s25 = smov 64  }
   0x4   :  { %4 = vst.msk [vmem:[#allocation0] sm:$0x1] %vm3_vm0, %v2_v6   ;;  %v97_v7 = vld [vmem:[%s185_s0 + $0x7] sm:$0x1]   ;;  %v98_v8 = vld [vmem:[%s185_s0 + $0x6] sm:$0x1]  }
   0x5   :  { %s123_s30 = smov 56   ;;  %s124_s2 = smov 48   ;;  %v99_v9 = vld [vmem:[%s185_s0 + $0x5] sm:$0x1]   ;;  %v100_v10 = vld [vmem:[%s185_s0 + $0x4] sm:$0x1]  }
   0x6   :  { %13 = vrot.lane.b32.xlu0 %v92_v2, %s119_s16  ;;  %25 = vrot.lane.b32.xlu1 %v94_v3, %s120_s17  ;;  %s125_s7 = smov 40   ;;  %s126_s8 = smov 32   ;;  %v101_v11 = vld [vmem:[%s185_s0 + $0x3] sm:$0x1]   ;;  %v102_v12 = vld [vmem:[%s185_s0 + $0x2] sm:$0x1]  }
   0x7   :  { %s127_s13 = smov 24   ;;  %s128_s14 = smov 16   ;;  %v103_v13 = vld [vmem:[%s185_s0 + $0x1] sm:$0x1]   ;;  %vm27_vm4 = vcmask 720512   ;;  %vm33_vm5 = vcmask 654912  }
   0x8   :  { %s129_s0 = smov 8   ;;  %vm39_vm6 = vcmask 589312   ;;  %vm45_vm7 = vcmask 523712   ;;  %vm51_vm8 = vcmask 458112   ;;  %vm57_vm9 = vcmask 392512  }
   0x9   :  { %vm63_vm10 = vcmask 326912   ;;  %vm69_vm11 = vcmask 261312   ;;  %vm75_vm12 = vcmask 195712   ;;  %vm81_vm13 = vcmask 130112  }
   0xa   :  { %31 = vrot.lane.b32.xlu0 %v95_v4, %s121_s24  ;;  %37 = vrot.lane.b32.xlu1 %v96_v5, %s122_s25 }
   0xe   :  { %43 = vrot.lane.b32.xlu0 %v97_v7, %s123_s30  ;;  %49 = vrot.lane.b32.xlu1 %v98_v8, %s124_s2 }
  0x12   :  { %55 = vrot.lane.b32.xlu0 %v99_v9, %s125_s7  ;;  %61 = vrot.lane.b32.xlu1 %v100_v10, %s126_s8 }
  0x16   :  { %67 = vrot.lane.b32.xlu0 %v101_v11, %s127_s13  ;;  %73 = vrot.lane.b32.xlu1 %v102_v12, %s128_s14 }
  0x1a   :  { %79 = vrot.lane.b32.xlu0 %v103_v13, %s129_s0 }
  0x74   :  { %v8_v14 = vpop.permute.xlu0 %7   ;;  %v20_v15 = vpop.permute.xlu1 %19  }
  0x75   :  { %10 = vst.msk [vmem:[#allocation0] sm:$0x1] %vm9_vm1, %v8_v14  }
  0x78   :  { %v14_v16 = vpop.permute.xlu0 %13   ;;  %v26_v17 = vpop.permute.xlu1 %25  }
  0x79   :  { %16 = vst.msk [vmem:[#allocation0] sm:$0x1] %vm15_vm2, %v14_v16  }
  0x7a   :  { %22 = vst.msk [vmem:[#allocation0] sm:$0x1] %vm21_vm3, %v20_v15  }
  0x7b   :  { %28 = vst.msk [vmem:[#allocation0] sm:$0x1] %vm27_vm4, %v26_v17  }
  0x7c   :  { %v32_v18 = vpop.permute.xlu0 %31   ;;  %v38_v19 = vpop.permute.xlu1 %37  }
  0x7d   :  { %34 = vst.msk [vmem:[#allocation0] sm:$0x1] %vm33_vm5, %v32_v18  }
  0x7e   :  { %40 = vst.msk [vmem:[#allocation0] sm:$0x1] %vm39_vm6, %v38_v19  }
  0x80   :  { %v44_v20 = vpop.permute.xlu0 %43   ;;  %v50_v21 = vpop.permute.xlu1 %49  }
  0x81   :  { %46 = vst.msk [vmem:[#allocation0] sm:$0x1] %vm45_vm7, %v44_v20  }
  0x82   :  { %52 = vst.msk [vmem:[#allocation0] sm:$0x1] %vm51_vm8, %v50_v21  }
  0x84   :  { %v56_v22 = vpop.permute.xlu0 %55   ;;  %v62_v23 = vpop.permute.xlu1 %61  }
  0x85   :  { %58 = vst.msk [vmem:[#allocation0] sm:$0x1] %vm57_vm9, %v56_v22  }
  0x86   :  { %64 = vst.msk [vmem:[#allocation0] sm:$0x1] %vm63_vm10, %v62_v23  }
  0x88   :  { %v68_v24 = vpop.permute.xlu0 %67   ;;  %v74_v25 = vpop.permute.xlu1 %73  }
  0x89   :  { %70 = vst.msk [vmem:[#allocation0] sm:$0x1] %vm69_vm11, %v68_v24  }
  0x8a   :  { %76 = vst.msk [vmem:[#allocation0] sm:$0x1] %vm75_vm12, %v74_v25  }
  0x8c   :  { %v80_v26 = vpop.permute.xlu0 %79  }
  0x8d   :  { %82 = vst.msk [vmem:[#allocation0] sm:$0x1] %vm81_vm13, %v80_v26  }
  0x94   :  { %v87_v27 = vld [vmem:[#allocation0] sm:$0x1] }
  0x95   :  { %90 = vst [vmem:[%s186_s1] sm:$0x1] %v87_v27 }

// kernel: batch_norm_conv2d.3
= control target key start
LH: loop header
LB: loop body
LE: loop exit
PB: predicated region body
PF: predicated region fallthrough
CT: control target
= control target key end

     0   :  { %s303_s12 = smov 0   ;;  %s320_s0 = inlined_call_operand.vmem [shape: f32[2,14,112], index: 0, kind: input, shape index: {}, may-alias: {0,3}]   ;;  %s321_s1 = inlined_call_operand.vmem [shape: f32[1,1,112], index: 1, kind: input, shape index: {}]   ;;  %s322_s2 = inlined_call_operand.vmem [shape: f32[1,1,112], index: 2, kind: input, shape index: {}]   ;;  %s323_s3 = inlined_call_operand.vmem [shape: f32[2,14,112], index: 3, kind: output, shape index: {}, may-alias: {0,3}]  }
   0x1 LB: > { %s252_s13 = sadd.s32 4294967295, %s281_s12   ;;  %p256_p0 = scmp.ge.s32.totalorder %s281_s12, 1  ;;  %s281_s12 = sphi %s303_s12, %s13_s12  }
   0x2   : > { %p137_p1 = scmp.lt.s32.totalorder %s281_s12, 3 }
   0x4   : > { %p138_p2 = pnand %p256_p0, %p137_p1 }
   0x5   : > { %p161_p3 = scmp.lt.s32.totalorder (!%p138_p2), %s252_s13, 1 }
   0x6   : > { %141 = sbr.rel (%p138_p2) target bundleno = 23 (0x17), region = 32 }
   0xb   : > { %s325_s13 = smov (!%p161_p3, %s252_s13), 1  ;;  %v261_v0 = vld [vmem:[%s321_s1] ss:$0 sm:$0xff]  ;;  %vm193_vm0 = vcmask 916480   ;;  %vm195_vm1 = vcmask 914432  }
   0xc   : > { %s265_s14 = sshll.u32 %s325_s13, 4  ;;  %v262_v3 = vld [vmem:[%s322_s2] ss:$0 sm:$0xff] }
   0xd   : > { %s165_s19 = scalar_lea.vmem %s320_s0, %s265_s14  ;;  %s170_s24 = scalar_lea.vmem %s323_s3, %s265_s14 }
   0xe   : > { %v171_v1 = vld [vmem:[%s165_s19] sm:$0xff]  ;;  %v172_v2 = vld [vmem:[%s165_s19 + $0x8] sm:$0x3f] }
   0xf   : > { %v180_v4 = vmul.f32 %v261_v0, %v171_v1  ;;  %v181_v5 = vmul.f32 %v261_v0, %v172_v2 }
  0x11   : > { %v189_v6 = vadd.f32 %v262_v3, %v180_v4  ;;  %v190_v7 = vadd.f32 %v262_v3, %v181_v5 }
  0x13   : > { %v191_v8 = vmax.f32 %v189_v6, 0.0  ;;  %v192_v9 = vmax.f32 %v190_v7, 0.0 }
  0x15   : > { %194 = vst.msk [vmem:[%s170_s24] sm:$0xff] %vm193_vm0, %v191_v8 }
  0x16   : > { %196 = vst.msk [vmem:[%s170_s24 + $0x8] sm:$0x3f] %vm195_vm1, %v192_v9 }
  0x17 PF: > { %s13_s12 = sadd.s32 1, %s281_s12  }
  0x18   : > { %p10_p4 = scmp.ge.s32.totalorder %s13_s12, 4  }
  0x1a   :  { %12 = sbr.rel (!%p10_p4) target bundleno = 1 (0x1), region = 62 }

// kernel: batch_norm_conv2d.2
= control target key start
LH: loop header
LB: loop body
LE: loop exit
PB: predicated region body
PF: predicated region fallthrough
CT: control target
= control target key end

     0   :  { %s788_s15 = smov 0   ;;  %s906_s0 = inlined_call_operand.vmem [shape: f32[2,16,64], index: 0, kind: input, shape index: {}]   ;;  %s907_s1 = inlined_call_operand.vmem [shape: f32[3,64,112], index: 1, kind: input, shape index: {}]   ;;  %s908_s2 = inlined_call_operand.vmem [shape: f32[2,14,112], index: 2, kind: output, shape index: {0}]   ;;  %s909_s3 = inlined_call_operand.vmem [shape: f32[2,1,112], index: 3, kind: output, shape index: {1}]   ;;  %s910_s4 = inlined_call_operand.vmem [shape: f32[2,1,112], index: 4, kind: output, shape index: {2}]  }
   0x1 LB: > { %s625_s16 = sadd.s32 4294967295, %s761_s15   ;;  %p629_p0 = scmp.ge.s32.totalorder %s761_s15, 1  ;;  %s761_s15 = sphi %s788_s15, %s15_s15  }
   0x2   : > { %p167_p1 = scmp.lt.s32.totalorder %s761_s15, 3 }
   0x4   : > { %p168_p2 = pnand %p629_p0, %p167_p1 }
   0x5   : > { %p199_p3 = scmp.lt.s32.totalorder (!%p168_p2), %s625_s16, 1 }
   0x6   : > { %171 = sbr.rel (%p168_p2) target bundleno = 261 (0x105), region = 28 }
   0xb   : > { %v641_v0 = vld [vmem:[%s907_s1 + $0x78] sm:$0xff]  ;;  %v640_v2 = vld [vmem:[%s907_s1 + $0x70] sm:$0xff]  ;;  %v639_v4 = vld [vmem:[%s907_s1 + $0x68] sm:$0xff]  ;;  %s912_s16 = smov (!%p199_p3, %s625_s16), 1  ;;  %vm236_vm0 = vcmask 523264   ;;  %vm495_vm1 = vcmask 914432  }
   0xc   : > { %v224_v1 = vld [vmem:[%s907_s1 + $0x38] sm:$0xff]  ;;  %690 = vmatprep.subr.mxu0 %v641_v0  ;;  %v223_v3 = vld [vmem:[%s907_s1 + $0x30] sm:$0xff]  ;;  %v222_v5 = vld [vmem:[%s907_s1 + $0x28] sm:$0xff]  ;;  %s658_s11 = sshll.u32 %s912_s16, 4  ;;  %vm493_vm2 = vcmask 916480   ;;  %s211_s26 = scalar_lea.vmem %s909_s3, %s912_s16  ;;  %vm506_vm3 = vcmask 909312  }
   0xd   : > { %709 = vmatprep.subr.mxu1 %v224_v1  ;;  %691 = vmatpush3.msra.mxu0 %v641_v0  ;;  %v638_v6 = vld [vmem:[%s907_s1 + $0x60] sm:$0xff]  ;;  %v637_v8 = vld [vmem:[%s907_s1 + $0x58] sm:$0xff]  ;;  %v636_v10 = vld [vmem:[%s907_s1 + $0x50] sm:$0xff]  ;;  %s846_s24 = scalar_lea.vmem %s906_s0, %s658_s11  ;;  %s208_s25 = scalar_lea.vmem %s908_s2, %s658_s11 }
   0xe   : > { %710 = vmatpush3.msra.mxu1 %v224_v1  ;;  %692 = vmatprep.subr.mxu0 %v640_v2  ;;  %v221_v7 = vld [vmem:[%s907_s1 + $0x20] sm:$0xff]  ;;  %v220_v9 = vld [vmem:[%s907_s1 + $0x18] sm:$0xff]  ;;  %v219_v11 = vld [vmem:[%s907_s1 + $0x10] sm:$0xff]  ;;  %s214_s29 = scalar_lea.vmem %s910_s4, %s912_s16 }
   0xf   : > { %711 = vmatprep.subr.mxu1 %v223_v3  ;;  %693 = vmatpush3.msra.mxu0 %v640_v2  ;;  %v635_v12 = vld [vmem:[%s907_s1 + $0x48] sm:$0xff]  ;;  %v634_v14 = vld [vmem:[%s907_s1 + $0x40] sm:$0xff]  ;;  %v653_v20 = vld [vmem:[%s907_s1 + $0xb8] sm:$0xff] }
  0x10   : > { %712 = vmatpush3.msra.mxu1 %v223_v3  ;;  %694 = vmatprep.subr.mxu0 %v639_v4  ;;  %v218_v13 = vld [vmem:[%s907_s1 + $0x8] sm:$0xff]  ;;  %v217_v15 = vld [vmem:[%s907_s1] sm:$0xff]  ;;  %v652_v22 = vld [vmem:[%s907_s1 + $0xb0] sm:$0xff] }
  0x11   : > { %713 = vmatprep.subr.mxu1 %v222_v5  ;;  %695 = vmatpush3.msra.mxu0 %v639_v4  ;;  %v225_v16 = vld [vmem:[%s846_s24 + $0x1] sm:$0xff]  ;;  %v226_v18 = vld [vmem:[%s846_s24 + $0x9] sm:$0x3f]  ;;  %v649_v25 = vld [vmem:[%s907_s1 + $0x98] sm:$0xff] }
  0x12   : > { %714 = vmatpush3.msra.mxu1 %v222_v5  ;;  %696 = vmatprep.subr.mxu0 %v638_v6  ;;  %v215_v17 = vld [vmem:[%s846_s24] sm:$0xff]  ;;  %v216_v19 = vld [vmem:[%s846_s24 + $0x8] sm:$0x3f]  ;;  %v648_v26 = vld [vmem:[%s907_s1 + $0x90] sm:$0xff] }
  0x13   : > { %715 = vmatprep.subr.mxu1 %v221_v7  ;;  %697 = vmatpush3.msra.mxu0 %v638_v6  ;;  %v399_v21 = vld [vmem:[%s846_s24 + $0x2] sm:$0xff]  ;;  %v400_v29 = vld [vmem:[%s846_s24 + $0xa] sm:$0x3f] }
  0x14   : > { %716 = vmatpush3.msra.mxu1 %v221_v7  ;;  %698 = vmatprep.subr.mxu0 %v637_v8  ;;  %v651_v23 = vld [vmem:[%s907_s1 + $0xa8] sm:$0xff]  ;;  %v650_v24 = vld [vmem:[%s907_s1 + $0xa0] sm:$0xff] }
  0x15   : > { %717 = vmatprep.subr.mxu1 %v220_v9  ;;  %699 = vmatpush3.msra.mxu0 %v637_v8  ;;  %v647_v27 = vld [vmem:[%s907_s1 + $0x88] sm:$0xff]  ;;  %v646_v28 = vld [vmem:[%s907_s1 + $0x80] sm:$0xff] }
  0x16   : > { %718 = vmatpush3.msra.mxu1 %v220_v9  ;;  %700 = vmatprep.subr.mxu0 %v636_v10 }
  0x17   : > { %719 = vmatprep.subr.mxu1 %v219_v11  ;;  %701 = vmatpush3.msra.mxu0 %v636_v10 }
  0x18   : > { %720 = vmatpush3.msra.mxu1 %v219_v11  ;;  %702 = vmatprep.subr.mxu0 %v635_v12 }
  0x19   : > { %721 = vmatprep.subr.mxu1 %v218_v13  ;;  %703 = vmatpush3.msra.mxu0 %v635_v12 }
  0x1a   : > { %722 = vmatpush3.msra.mxu1 %v218_v13  ;;  %704 = vmatprep.subr.mxu0 %v634_v14 }
  0x1b   : > { %723 = vmatprep.subr.mxu1 %v217_v15  ;;  %705 = vmatpush3.msra.mxu0 %v634_v14 }
  0x1c   : > { %706 = vmatprep.mubr.msk.f32.mxu0 %vm236_vm0, %v225_v16  ;;  %724 = vmatpush3.msra.mxu1 %v217_v15 }
  0x1d   : > { %725 = vmatprep.mubr.msk.f32.mxu1 %vm236_vm0, %v215_v17  ;;  %707 = vmatmul.mubr.msk.f32.vlgmr.msra.gmra.mxu0 %vm236_vm0, %v226_v18 }
  0x1e   : > { %726 = vmatmul.mubr.msk.f32.vlgmr.msra.gmra.mxu1 %vm236_vm0, %v216_v19  ;;  %728 = vmatprep.subr.mxu0 %v653_v20 }
  0x1f   : > { %744 = vmatprep.mubr.msk.f32.mxu0 %vm236_vm0, %v399_v21  ;;  %729 = vmatpush3.msra.mxu0 %v653_v20 }
  0x20   : > { %730 = vmatprep.subr.mxu0 %v652_v22 }
  0x21   : > { %731 = vmatpush3.msra.mxu0 %v652_v22 }
  0x22   : > { %732 = vmatprep.subr.mxu0 %v651_v23 }
  0x23   : > { %733 = vmatpush3.msra.mxu0 %v651_v23 }
  0x24   : > { %734 = vmatprep.subr.mxu0 %v650_v24 }
  0x25   : > { %735 = vmatpush3.msra.mxu0 %v650_v24 }
  0x26   : > { %736 = vmatprep.subr.mxu0 %v649_v25 }
  0x27   : > { %737 = vmatpush3.msra.mxu0 %v649_v25 }
  0x28   : > { %738 = vmatprep.subr.mxu0 %v648_v26 }
  0x29   : > { %739 = vmatpush3.msra.mxu0 %v648_v26 }
  0x2a   : > { %740 = vmatprep.subr.mxu0 %v647_v27 }
  0x2b   : > { %741 = vmatpush3.msra.mxu0 %v647_v27 }
  0x2c   : > { %742 = vmatprep.subr.mxu0 %v646_v28 }
  0x2d   : > { %743 = vmatpush3.msra.mxu0 %v646_v28 }
  0x2e   : > { %745 = vmatmul.mubr.msk.f32.vlgmr.msra.gmra.mxu0 %vm236_vm0, %v400_v29 }
  0xdd   : > { %v708_v30 = vpop.f32.mrf.mxu0 }
  0xde   : > { %v727_v31 = vpop.f32.mrf.mxu1 }
  0xdf   : > { %v309_v32 = vpop.f32.mrf.mxu0  ;;  %v396_v34 = vadd.f32 %v727_v31, %v708_v30 }
  0xe0   : > { %v390_v33 = vpop.f32.mrf.mxu1 }
  0xe1   : > { %v391_v36 = vadd.f32 %v390_v33, %v309_v32 }
  0xee   : > { %v746_v35 = vpop.f32.mrf.mxu0 }
  0xef   : > { %v492_v37 = vadd.f32 %v746_v35, %v396_v34 }
  0xf0   : > { %v482_v38 = vpop.f32.mrf.mxu0 }
  0xf1   : > { %496 = vst.msk [vmem:[%s208_s25 + $0x8] sm:$0x3f] %vm495_vm1, %v492_v37  ;;  %v509_v39 = vmul.f32 %v492_v37, %v492_v37  ;;  %v491_v40 = vadd.f32 %v482_v38, %v391_v36  ;;  %v498_v41 = vsel %vm495_vm1, %v492_v37, 0.0 }
  0xf3   : > { %494 = vst.msk [vmem:[%s208_s25] sm:$0xff] %vm493_vm2, %v491_v40  ;;  %v497_v42 = vsel %vm493_vm2, %v491_v40, 0.0  ;;  %v508_v43 = vmul.f32 %v491_v40, %v491_v40  ;;  %v511_v45 = vsel %vm495_vm1, %v509_v39, 0.0 }
  0xf4   : > { %v499_v44 = vadd.f32 %v498_v41, %v497_v42 }
  0xf5   : > { %v510_v46 = vsel %vm493_vm2, %v508_v43, 0.0 }
  0xf6   : > { %v500_v47 = vrot.slane %v499_v44, 4  ;;  %v512_v48 = vadd.f32 %v511_v45, %v510_v46 }
  0xf8   : > { %v501_v49 = vadd.f32 %v500_v47, %v499_v44  ;;  %v513_v50 = vrot.slane %v512_v48, 4 }
  0xfa   : > { %v502_v51 = vrot.slane %v501_v49, 2  ;;  %v514_v52 = vadd.f32 %v513_v50, %v512_v48 }
  0xfc   : > { %v503_v53 = vadd.f32 %v502_v51, %v501_v49  ;;  %v515_v54 = vrot.slane %v514_v52, 2 }
  0xfe   : > { %v504_v55 = vrot.slane %v503_v53, 1  ;;  %v516_v56 = vadd.f32 %v515_v54, %v514_v52 }
 0x100   : > { %v505_v57 = vadd.f32 %v504_v55, %v503_v53  ;;  %v517_v58 = vrot.slane %v516_v56, 1 }
 0x102   : > { %507 = vst.msk [vmem:[%s211_s26] sm:$0x1] %vm506_vm3, %v505_v57  ;;  %v518_v59 = vadd.f32 %v517_v58, %v516_v56 }
 0x104   : > { %519 = vst.msk [vmem:[%s214_s29] sm:$0x1] %vm506_vm3, %v518_v59 }
 0x105 PF: > { %s15_s15 = sadd.s32 1, %s761_s15  }
 0x106   : > { %p12_p4 = scmp.ge.s32.totalorder %s15_s15, 4  }
 0x108   :  { %14 = sbr.rel (!%p12_p4) target bundleno = 1 (0x1), region = 84 }

</bundles_post_ra>
